<compile_context>
chip_gen: v7x
topology: tpu7x:2x2x1
jax: 0.10.0
libtpu: 0.0.40
codegen_flags: <defaults>
</compile_context>

<pallas_src>
import functools

import jax
import jax.numpy as jnp
import numpy as np
from jax.experimental import pallas as pl
from jax.experimental.pallas import tpu as pltpu


# ----------------------------------------------------------------------------
# Helpers
# ----------------------------------------------------------------------------
def _vmem_budget_and_limit():
    """(per-block working-set budget, scoped vmem_limit_bytes), chip-aware."""
    capacity = 64 * 1024 * 1024            # safe default (v7x-sized) if query fails
    try:
        capacity = int(pltpu.get_tpu_info().vmem_capacity_bytes)
    except Exception:
        pass
    if capacity < (32 << 20):              # sanity clamp
        capacity = 64 << 20
    capacity = min(capacity, 128 << 20)
    limit = (capacity * 3) // 4            # 96 MiB on v5e/v6e, 48 MiB on v7x
    budget = (capacity * 3) // 8           # 48 MiB on v5e/v6e, 24 MiB on v7x
    return budget, limit


def _pool_mask(in_size, out_size, scale, stride):
    """(out_size, in_size) 0/1 mask: mask[o, i] = 1 iff i is inside window o."""
    rows = np.arange(out_size)[:, None]
    cols = np.arange(in_size)[None, :]
    start = rows * stride
    return ((cols >= start) & (cols < start + scale)).astype(np.float32)


def _divisors_desc(n):
    return [d for d in range(n, 0, -1) if n % d == 0]


def _pick_cblk(nc, row_ok, need_fn, budget):
    """Channel-block size: largest aligned divisor of nc whose block fits
    `budget`, preferring <= nc//2 so the grid has >= 2 steps (v7x megacore).
    Relaxes the cap (then the budget) instead of failing."""
    divs = _divisors_desc(nc)
    cap = max(1, nc // 2)
    capped = [d for d in divs if d <= cap and row_ok(d)]
    anyok = [d for d in divs if row_ok(d)]          # always contains d == nc
    for pool in ([capped, anyok] if capped else [anyok]):
        for d in pool:
            if need_fn(d) <= budget:
                return d
    pool = capped if capped else anyok
    return pool[-1]                                 # smallest aligned block


# ----------------------------------------------------------------------------
# Fast path (scale <= stride, h % stride == 0; covers V-Net scale == stride)
# ----------------------------------------------------------------------------
def _lowpass_lane_kernel(x_ref, band_ref, o_ref, *, scale, stride, w, gin, gout,
                         ngroups, op_dtype):
    # x_ref   : (rows, stride*w)  -- each row = `stride` original image rows.
    # band_ref: (gin, gout)       -- column-pooling band mask, 1/scale^2 folded in.
    # o_ref   : (rows, ngroups*gout)
    # H pooling: `scale` aligned contiguous lane-slice loads + VPU adds (f32).
    acc = x_ref[:, 0:w].astype(jnp.float32)
    for di in range(1, scale):
        acc = acc + x_ref[:, di * w:(di + 1) * w].astype(jnp.float32)
    acc = acc.astype(op_dtype)
    band = band_ref[...]
    # W pooling: one small banded MXU matmul per `gout`-wide output group.
    for g in range(ngroups):
        lo = g * gout * stride
        seg = acc[:, lo:lo + gin]
        o_ref[:, g * gout:(g + 1) * gout] = jnp.dot(
            seg, band, preferred_element_type=jnp.float32).astype(o_ref.dtype)


def _lowpass_strided_kernel(x_ref, pwt_ref, o_ref, *, scale, stride, rows_out,
                            op_dtype):
    # x_ref : (rows_in, wt_in); pwt_ref: (wt_in, wt); o_ref: (rows_out, wt)
    # H pooling: `scale` sublane-strided loads + VPU adds (f32 accumulate).
    acc = x_ref[pl.ds(0, rows_out, stride), :].astype(jnp.float32)
    for di in range(1, scale):
        acc = acc + x_ref[pl.ds(di, rows_out, stride), :].astype(jnp.float32)
    # W pooling: one lane-contracting MXU matmul (mask carries 1/scale^2).
    o_ref[...] = jnp.dot(acc.astype(op_dtype), pwt_ref[...],
                         preferred_element_type=jnp.float32).astype(o_ref.dtype)


def _low_pass_fast(x, scale, stride, ho, wo, budget, limit):
    n, c, h, w = x.shape
    nc = n * c
    # Invariant for the flattened-row trick (guaranteed by the gate).
    assert ho * stride == h, "fast path requires non-overlapping, H-covering windows"
    itemsize = x.dtype.itemsize
    if x.dtype == jnp.bfloat16 or x.dtype == jnp.float16:
        op_dtype = jnp.bfloat16        # native MXU rate; inputs are low precision anyway
    else:
        op_dtype = jnp.float32         # exact w.r.t. the f32 reference
    op_size = np.dtype(op_dtype).itemsize
    inv_area = 1.0 / float(scale * scale)

    # ---- Variant A: lane-slice H pooling + banded W matmul (W % 128 == 0) ----
    if w % 128 == 0:
        gin, gout, ngroups = w, wo, 1                         # dense fallback
        if wo * stride <= w:
            for cand in (512, 256, 128):
                if wo % cand == 0:
                    gin, gout, ngroups = cand * stride, cand, wo // cand
                    break

        def need_a(d):
            r = d * ho
            return (2 * r * stride * w * itemsize             # input (double-buffered)
                    + 2 * r * wo * itemsize                   # output
                    + 2 * r * w * 4                           # f32 acc (+ op-dtype copy)
                    + r * gout * 4                            # per-group matmul result
                    + 2 * gin * gout * op_size)               # mask

        def row_ok_a(d):
            return d == nc or (d * ho) % 8 == 0

        cblk = _pick_cblk(nc, row_ok_a, need_a, budget)
        if need_a(cblk) <= budget:
            rows_blk = cblk * ho
            x2 = x.reshape(nc * ho, stride * w)               # free metadata reshape
            band = jnp.asarray(_pool_mask(gin, gout, scale, stride).T * inv_area,
                               dtype=op_dtype)
            kernel = functools.partial(
                _lowpass_lane_kernel, scale=scale, stride=stride, w=w,
                gin=gin, gout=gout, ngroups=ngroups, op_dtype=op_dtype)
            cost = pl.CostEstimate(
                flops=int(2 * nc * ho * wo * gin + nc * ho * w * max(scale - 1, 0)),
                transcendentals=0,
                bytes_accessed=int(nc * h * w * itemsize + nc * ho * wo * itemsize
                                   + gin * gout * op_size))
            out2 = pl.pallas_call(
                kernel,
                out_shape=jax.ShapeDtypeStruct((nc * ho, wo), x.dtype),
                grid=(nc // cblk,),
                in_specs=[pl.BlockSpec((rows_blk, stride * w), lambda b: (b, 0)),
                          pl.BlockSpec((gin, gout), lambda b: (0, 0))],
                out_specs=pl.BlockSpec((rows_blk, wo), lambda b: (b, 0)),
                compiler_params=pltpu.CompilerParams(
                    dimension_semantics=("parallel",),
                    vmem_limit_bytes=limit),
                cost_estimate=cost,
            )(x2, band)
            return out2.reshape(n, c, ho, wo)

    # ---- Variant B: sublane-strided H pooling, optional W-tile grid axis ----
    wt_cands = [wo]                                   # full width (dense mask) first
    if wo * stride <= w:                              # W tiles stay in bounds
        wt_cands += [d for d in _divisors_desc(wo) if d != wo and d % 128 == 0]

    def row_ok_b(d):
        return d == nc or ((d * h) % 8 == 0 and (d * ho) % 8 == 0)

    best = None
    fallback = None
    for wt in wt_cands:
        wt_in = w if wt == wo else wt * stride

        def need_b(d, wt=wt, wt_in=wt_in):
            return (2 * d * h * wt_in * itemsize
                    + 2 * d * ho * wt * itemsize
                    + d * ho * wt_in * 4 + d * ho * wt * 4
                    + 2 * wt_in * wt * op_size)

        cblk = _pick_cblk(nc, row_ok_b, need_b, budget)
        fallback = (wt, wt_in, cblk)
        if need_b(cblk) <= budget:
            best = fallback
            break
    if best is None:
        best = fallback      # smallest W tile / channel block; VMEM limit has headroom
    wt, wt_in, cblk = best

    rows_in, rows_out = cblk * h, cblk * ho
    x2 = x.reshape(nc * h, w)                         # free metadata reshape
    pwt = jnp.asarray(_pool_mask(wt_in, wt, scale, stride).T * inv_area,
                      dtype=op_dtype)                 # (wt_in, wt), band or dense
    kernel = functools.partial(_lowpass_strided_kernel, scale=scale, stride=stride,
                               rows_out=rows_out, op_dtype=op_dtype)
    cost = pl.CostEstimate(
        flops=int(2 * nc * ho * wo * wt_in + nc * ho * w * max(scale - 1, 0)),
        transcendentals=0,
        bytes_accessed=int(nc * h * w * itemsize + nc * ho * wo * itemsize
                           + wt_in * wt * op_size))
    out2 = pl.pallas_call(
        kernel,
        out_shape=jax.ShapeDtypeStruct((nc * ho, wo), x.dtype),
        grid=(nc // cblk, wo // wt),
        in_specs=[pl.BlockSpec((rows_in, wt_in), lambda b, j: (b, j)),
                  pl.BlockSpec((wt_in, wt), lambda b, j: (0, 0))],
        out_specs=pl.BlockSpec((rows_out, wt), lambda b, j: (b, j)),
        compiler_params=pltpu.CompilerParams(
            dimension_semantics=("parallel", "parallel"),
            vmem_limit_bytes=limit),
        cost_estimate=cost,
    )(x2, pwt)
    return out2.reshape(n, c, ho, wo)


# ----------------------------------------------------------------------------
# General (cold) path: overlapping windows (scale > stride) or H % stride != 0
# ----------------------------------------------------------------------------
def _lowpass_general_kernel(x_ref, pwt_ref, ph_ref, o_ref):
    # x_ref: (cblk, H, W); pwt_ref: (W, Wo) (1/scale^2 folded in); ph_ref: (Ho, H)
    x = x_ref[...].astype(jnp.float32)
    # W pooling first: contraction over the minor (lane) dim, no transpose.
    rows = jnp.einsum("chw,wp->chp", x, pwt_ref[...],
                      preferred_element_type=jnp.float32)     # (cblk, H, Wo)
    # H pooling with the (Ho, H) mask.
    # TODO(synk): contracts the sublane dim (possible hidden relayout); cold
    # path only — V-Net always uses scale == stride and never reaches it.
    out = jnp.einsum("oh,chp->cop", ph_ref[...], rows,
                     preferred_element_type=jnp.float32)      # (cblk, Ho, Wo)
    o_ref[...] = out.astype(o_ref.dtype)


def _low_pass_general(x, scale, stride, ho, wo, budget, limit):
    n, c, h, w = x.shape
    nc = n * c
    itemsize = x.dtype.itemsize
    inv_area = 1.0 / float(scale * scale)
    x3 = x.reshape(nc, h, w)
    pwt = jnp.asarray(_pool_mask(w, wo, scale, stride).T * inv_area, jnp.float32)
    ph = jnp.asarray(_pool_mask(h, ho, scale, stride), jnp.float32)

    def need(d):
        return (2 * d * h * w * itemsize + 2 * d * ho * wo * itemsize
                + d * h * w * 4 + d * h * wo * 4 + d * ho * wo * 4
                + 2 * (w * wo + ho * h) * 4)

    cblk = _pick_cblk(nc, lambda d: True, need, budget)
    cost = pl.CostEstimate(
        flops=int(2 * nc * h * w * wo + 2 * nc * ho * h * wo),
        transcendentals=0,
        bytes_accessed=int(nc * h * w * itemsize + nc * ho * wo * itemsize
                           + (w * wo + ho * h) * 4))
    out3 = pl.pallas_call(
        _lowpass_general_kernel,
        out_shape=jax.ShapeDtypeStruct((nc, ho, wo), x.dtype),
        grid=(nc // cblk,),
        in_specs=[pl.BlockSpec((cblk, h, w), lambda b: (b, 0, 0)),
                  pl.BlockSpec((w, wo), lambda b: (0, 0)),
                  pl.BlockSpec((ho, h), lambda b: (0, 0))],
        out_specs=pl.BlockSpec((cblk, ho, wo), lambda b: (b, 0, 0)),
        compiler_params=pltpu.CompilerParams(
            dimension_semantics=("parallel",),
            vmem_limit_bytes=limit),
        cost_estimate=cost,
    )(x3, pwt, ph)
    return out3.reshape(n, c, ho, wo)


# ----------------------------------------------------------------------------
# Public API
# ----------------------------------------------------------------------------
def low_pass(x, scale, stride, *, vmem_block_budget=None):
    """Pallas TPU implementation of low_pass_filter (box average pooling), NCHW."""
    n, c, h, w = x.shape
    ho = (h - scale) // stride + 1
    wo = (w - scale) // stride + 1
    budget, limit = _vmem_budget_and_limit()
    if vmem_block_budget is not None:
        budget = int(vmem_block_budget)      # test / tuning override
    if scale <= stride and h % stride == 0:
        return _low_pass_fast(x, scale, stride, ho, wo, budget, limit)
    return _low_pass_general(x, scale, stride, ho, wo, budget, limit)


low_pass_filter = low_pass


class LowPass:
    """Mirror of the PyTorch module: LowPass(scale, stride)(x)."""

    def __init__(self, scale, stride):
        self.scale = scale
        self.stride = stride

    def __call__(self, x):
        return low_pass_filter(x, self.scale, self.stride)


# ----------------------------------------------------------------------------
# Reference + self-test
# ----------------------------------------------------------------------------
def _reference(x, scale, stride):
    n, c, h, w = x.shape
    ho = (h - scale) // stride + 1
    wo = (w - scale) // stride + 1
    acc = jnp.zeros((n, c, ho, wo), jnp.float32)
    xf = x.astype(jnp.float32)
    for di in range(scale):
        for dj in range(scale):
            acc = acc + jax.lax.slice(
                xf, (0, 0, di, dj),
                (n, c, di + (ho - 1) * stride + 1, dj + (wo - 1) * stride + 1),
                (1, 1, stride, stride))
    return (acc / (scale * scale)).astype(x.dtype)


def _check(name, out, ref, atol, rtol):
    assert out.shape == ref.shape, (name, out.shape, ref.shape)
    a = out.astype(jnp.float32)
    b = ref.astype(jnp.float32)
    assert jnp.allclose(a, b, atol=atol, rtol=rtol), (
        name, float(jnp.max(jnp.abs(a - b))))


if __name__ == "__main__":
    key = jax.random.PRNGKey(0)
    k1, k2, k3, k4 = jax.random.split(key, 4)

    # 1) V-Net hot case (scale == stride): strided fast path, single W tile.
    x = jax.random.normal(k1, (2, 4, 16, 16), dtype=jnp.float32)
    out = jax.block_until_ready(LowPass(2, 2)(x))
    _check("vnet", out, _reference(x, 2, 2), 1e-5, 1e-5)

    # 2) Overlapping windows (scale > stride): general einsum path.
    out = jax.block_until_ready(low_pass(x, 3, 1))
    _check("overlap", out, _reference(x, 3, 1), 1e-5, 1e-5)

    # 3) Lane-slice + banded-mask variant (W % 128 == 0), f32.
    xw = jax.random.normal(k2, (2, 2, 16, 768), dtype=jnp.float32)
    out = jax.block_until_ready(low_pass(xw, 2, 2))
    _check("lane", out, _reference(xw, 2, 2), 1e-4, 1e-4)

    # 4) W-tiled strided variant (tiny budget override forces >1 W tile).
    xt = jax.random.normal(k3, (1, 2, 16, 512), dtype=jnp.float32)
    out = jax.block_until_ready(low_pass(xt, 2, 2, vmem_block_budget=1 << 14))
    _check("wtiled", out, _reference(xt, 2, 2), 1e-4, 1e-4)

    # 5) bf16 inputs (native bf16 MXU operands).
    xb = jax.random.normal(k4, (2, 2, 16, 256), dtype=jnp.bfloat16)
    out = jax.block_until_ready(low_pass(xb, 2, 2))
    _check("bf16", out, _reference(xb, 2, 2), 5e-2, 5e-2)

    print("KERNEL_OK")
</pallas_src>

<mosaic_0001>
module attributes {stable_mosaic.version = 11 : i64} {
  func.func @_lowpass_strided_kernel(%arg0: i32, %arg1: i32, %arg2: memref<64x16xf32, #tpu.memory_space<vmem>>, %arg3: memref<16x8xf32, #tpu.memory_space<vmem>>, %arg4: memref<32x8xf32, #tpu.memory_space<vmem>>) attributes {dimension_semantics = [#tpu.dimension_semantics<parallel>, #tpu.dimension_semantics<parallel>], iteration_bounds = array<i64: 2, 1>, scalar_prefetch = 0 : i64, scratch_operands = 0 : i64, tpu.core_type = #tpu.core_type<tc>, window_params = [{transform_indices = @transform_0, window_bounds = array<i64: 64, 16>}, {pipeline_mode = #tpu.pipeline_mode<synchronous>, transform_indices = @transform_1, window_bounds = array<i64: 16, 8>}, {transform_indices = @transform_2, window_bounds = array<i64: 32, 8>}]} {
    %c0 = arith.constant 0 : index
    %c0_0 = arith.constant 0 : index
    %0 = tpu.strided_load %arg2[%c0, %c0_0] {strides = array<i32: 2, 1>} : memref<64x16xf32, #tpu.memory_space<vmem>>, vector<32x16xf32>
    %c1 = arith.constant 1 : index
    %c0_1 = arith.constant 0 : index
    %1 = tpu.strided_load %arg2[%c1, %c0_1] {strides = array<i32: 2, 1>} : memref<64x16xf32, #tpu.memory_space<vmem>>, vector<32x16xf32>
    %2 = arith.addf %0, %1 : vector<32x16xf32>
    %c0_2 = arith.constant 0 : index
    %c0_3 = arith.constant 0 : index
    %3 = vector.load %arg3[%c0_2, %c0_3] : memref<16x8xf32, #tpu.memory_space<vmem>>, vector<16x8xf32>
    %cst = arith.constant dense<0.000000e+00> : vector<32x8xf32>
    %4 = tpu.matmul %2, %3, %cst {dimension_numbers = #tpu.dot_dimension_numbers<[1], [0], [0], [1], [0, 0, 1, 1], [], []>} : vector<32x16xf32>, vector<16x8xf32>, vector<32x8xf32> -> vector<32x8xf32>
    %c0_4 = arith.constant 0 : index
    %c0_5 = arith.constant 0 : index
    %5 = vector.load %arg4[%c0_4, %c0_5] : memref<32x8xf32, #tpu.memory_space<vmem>>, vector<32x8xf32>
    tpu.vector_store %arg4[%c0_4, %c0_5], %4 {strides = array<i32>} : memref<32x8xf32, #tpu.memory_space<vmem>>, vector<32x8xf32>,
    return
  }
  func.func @transform_0(%arg0: i32, %arg1: i32) -> (i32, i32) {
    %c0_i32 = arith.constant 0 : i32
    return %arg0, %arg1 : i32, i32
  }
  func.func @transform_1(%arg0: i32, %arg1: i32) -> (i32, i32) {
    %c0_i32 = arith.constant 0 : i32
    %c0_i32_0 = arith.constant 0 : i32
    %c0_i32_1 = arith.constant 0 : i32
    return %c0_i32, %c0_i32_0 : i32, i32
  }
  func.func @transform_2(%arg0: i32, %arg1: i32) -> (i32, i32) {
    %c0_i32 = arith.constant 0 : i32
    return %arg0, %arg1 : i32, i32
  }
}

</mosaic_0001>

<bundles_post_ra>
// kernel: tpu_custom_call.1
= control target key start
LH: loop header
LB: loop body
LE: loop exit
PB: predicated region body
PF: predicated region fallthrough
CT: control target
= control target key end

     0   :  { %s487_s9 = smov 0   ;;  %s489_s10 = smov 0   ;;  %s534_s0 = inlined_call_operand.vmem [shape: f32[128,16], index: 0, kind: input, shape index: {}]   ;;  %s535_s1 = inlined_call_operand.vmem [shape: f32[16,8], index: 1, kind: input, shape index: {}]   ;;  %s536_s2 = inlined_call_operand.vmem [shape: f32[64,8], index: 2, kind: output, shape index: {}]  }
   0x1   :  { %s491_s11 = smov 0  }
   0x2 LB: > { %s24_s12 = sadd.s32 1, %s466_s10  ;;  %p384_p0 = scmp.ge.s32.totalorder %s470_s11, 1  ;;  %s470_s11 = sphi %s491_s11, %s12_s11   ;;  %s466_s10 = sphi %s489_s10, %s538_s10   ;;  %s462_s9 = sphi %s487_s9, %s537_s9  }
   0x3   : > { %p26_p1 = scmp.ge.s32.totalorder %s24_s12, 2  ;;  %p132_p2 = scmp.lt.s32.totalorder %s470_s11, 3 }
   0x5   : > { %s540_s12 = smov (%p26_p1, %s24_s12), 0  ;;  %p133_p3 = pnand %p384_p0, %p132_p2 }
   0x6   : > { %v197_v0 = vld [vmem:[%s535_s1] sm:$0xff] (!%p133_p3)  ;;  %v198_v1 = vld [vmem:[%s535_s1 + $0x8] sm:$0xff] (!%p133_p3)  ;;  %s385_s17 = sshll.u32 (!%p133_p3), %s462_s9, 3  ;;  %vm199_vm0 = vcmask (!%p133_p3), 130048   ;;  %s387_s22 = sshll.u32 (!%p133_p3), %s462_s9, 2  ;;  %vm297_vm1 = vcmask (!%p133_p3), 64512  }
   0x7   : > { %136 = sbr.rel (%p133_p3) target bundleno = 236 (0xec), region = 28  ;;  %v418_v2 = vpack.c.bf16 (!%p133_p3), %v198_v1, %v197_v0  ;;  %p161_p4 = scmp.lt.s32.totalorder (!%p133_p3), %s385_s17, 15 }
   0x8   : > { %p170_p5 = scmp.lt.s32.totalorder (!%p133_p3), %s387_s22, 7 }
   0x9   : > { %419 = vmatprep.subr.bf16.mxu0 (!%p133_p3), %v418_v2  ;;  %422 = vmatprep.subr.bf16.mxu1 (!%p133_p3), %v418_v2 }
   0xa   : > { %421 = vmatpush3.bf16.msra.mxu0 (!%p133_p3), %v418_v2  ;;  %423 = vmatpush3.bf16.msra.mxu1 (!%p133_p3), %v418_v2 }
   0xe   : > { %s542_s17 = smov (!%p161_p4, %s385_s17), 15  ;;  %s544_s22 = smov (!%p170_p5, %s387_s22), 7 }
   0xf   : > { %s386_s18 = sshll.u32 %s542_s17, 3  ;;  %s388_s23 = sshll.u32 %s544_s22, 3 }
  0x10   : > { %s167_s21 = scalar_lea.vmem %s534_s0, %s386_s18  ;;  %s176_s26 = scalar_lea.vmem %s536_s2, %s388_s23 }
  0x11   : > { %v178_v3 = vld [vmem:[%s167_s21] ss:$2 sm:$0xff]  ;;  %v392_v4 = vld [vmem:[%s167_s21 + $0x1] ss:$2 sm:$0xff]  ;;  %v389_v5 = vld [vmem:[%s167_s21 + $0x10] ss:$2 sm:$0xff] }
  0x12   : > { %v193_v6 = vadd.f32 %v392_v4, %v178_v3  ;;  %v393_v7 = vld [vmem:[%s167_s21 + $0x11] ss:$2 sm:$0xff]  ;;  %v390_v8 = vld [vmem:[%s167_s21 + $0x20] ss:$2 sm:$0xff]  ;;  %v394_v9 = vld [vmem:[%s167_s21 + $0x21] ss:$2 sm:$0xff] }
  0x13   : > { %v194_v10 = vadd.f32 %v393_v7, %v389_v5  ;;  %v195_v11 = vadd.f32 %v394_v9, %v390_v8  ;;  %v391_v12 = vld [vmem:[%s167_s21 + $0x30] ss:$2 sm:$0xff]  ;;  %v395_v13 = vld [vmem:[%s167_s21 + $0x31] ss:$2 sm:$0xff] }
  0x14   : > { %412 = vmatprep.mubr.msk.f32.mxu0 %vm199_vm0, %v193_v6  ;;  %v196_v14 = vadd.f32 %v395_v13, %v391_v12 }
  0x15   : > { %413 = vmatmul.mubr.msk.f32.vlgmr.msra.gmra.mrb[0].mxu0 %vm199_vm0, %v194_v10  ;;  %415 = vmatprep.mubr.msk.f32.mxu1 %vm199_vm0, %v195_v11 }
  0x16   : > { %416 = vmatmul.mubr.msk.f32.vlgmr.msra.gmra.mrb[0].mxu1 %vm199_vm0, %v196_v14 }
  0xe8   : > { %v414_v15 = vpop.f32.mrb[0].mxu0 }
  0xe9   : > { %v278_v16 = vpop.f32.mrb[1].mxu0  ;;  %v417_v17 = vpop.f32.mrb[0].mxu1  ;;  %299 = vst.msk [vmem:[%s176_s26 + $0x8] sm:$0xff] %vm297_vm1, %v414_v15 }
  0xea   : > { %298 = vst.msk [vmem:[%s176_s26] sm:$0xff] %vm297_vm1, %v278_v16  ;;  %v288_v18 = vpop.f32.mrb[1].mxu1  ;;  %301 = vst.msk [vmem:[%s176_s26 + $0x18] sm:$0xff] %vm297_vm1, %v417_v17 }
  0xeb   : > { %300 = vst.msk [vmem:[%s176_s26 + $0x10] sm:$0xff] %vm297_vm1, %v288_v18 }
  0xec PF: > { %s12_s11 = sadd.s32 1, %s470_s11   ;;  %s537_s9 = smov %s466_s10 }
  0xed   : > { %p9_p6 = scmp.ge.s32.totalorder %s12_s11, 4   ;;  %s538_s10 = smov %s540_s12 }
  0xef   :  { %11 = sbr.rel (!%p9_p6) target bundleno = 2 (0x2), region = 65 }

</bundles_post_ra>
